<compile_context>
chip_gen: v6e
topology: v6e:2x2x1
jax: 0.10.0
libtpu: 0.0.40
codegen_flags: <defaults>
</compile_context>

<pallas_src>
import functools

import jax
import jax.numpy as jnp
from jax.experimental import pallas as pl
from jax.experimental.pallas import tpu as pltpu


def _round_up(n: int, m: int) -> int:
    return ((n + m - 1) // m) * m


def _timestep_embedding_kernel(x_ref, w1_ref, b1_ref, w2_ref, b2_ref, o_ref):
    # Linear 1: bf16 operands on the MXU, f32 accumulation.
    h = jnp.dot(x_ref[...], w1_ref[...], preferred_element_type=jnp.float32)
    h = h + b1_ref[...]                       # bias add in f32 (VPU)
    # SiLU in float32 (accumulator already f32; sigmoid goes to the EUP).
    h = h * jax.nn.sigmoid(h)
    # Linear 2: cast activations to bf16 only to feed the MXU; accumulate in f32.
    y = jnp.dot(h.astype(w2_ref.dtype), w2_ref[...],
                preferred_element_type=jnp.float32)
    y = y + b2_ref[...]
    o_ref[...] = y.astype(o_ref.dtype)


@functools.partial(jax.jit, static_argnames=("block_b",))
def timestep_embedding(x, w1, b1, w2, b2, *, block_b: int = 128):
    """Fused Linear -> SiLU -> Linear (TimestepEmbedding.forward).

    x : (B, in_channels)
    w1: (in_channels, time_embed_dim)   (transposed vs. torch (out, in) layout)
    b1: (1, time_embed_dim)
    w2: (time_embed_dim, time_embed_dim)
    b2: (1, time_embed_dim)
    Returns (B, time_embed_dim) in x.dtype.
    """
    B, Cin = x.shape
    D = w1.shape[1]
    assert w1.shape[0] == Cin and w2.shape == (D, D)
    assert b1.shape == (1, D) and b2.shape == (1, D)
    out_dtype = x.dtype

    # Pad features to multiples of 128 (lane-dense, unmasked MXU/store path).
    Cp = _round_up(Cin, 128)
    Dp = _round_up(D, 128)

    # Batch tile: multiple of 16 (valid sublane tile for bf16 inputs and the
    # f32/bf16 output), capped at block_b.  Small batches only pad to 16 rows
    # instead of 128, so no wasted MXU work for typical timestep batches.
    TB = min(_round_up(block_b, 16), _round_up(B, 16))
    Bp = _round_up(B, TB)

    # bf16 MXU operands (halves weight/activation DMA bytes); biases stay f32.
    xb = jnp.pad(x.astype(jnp.bfloat16), ((0, Bp - B), (0, Cp - Cin)))
    w1b = jnp.pad(w1.astype(jnp.bfloat16), ((0, Cp - Cin), (0, Dp - D)))
    w2b = jnp.pad(w2.astype(jnp.bfloat16), ((0, Dp - D), (0, Dp - D)))
    b1p = jnp.pad(b1.astype(jnp.float32), ((0, 0), (0, Dp - D)))
    b2p = jnp.pad(b2.astype(jnp.float32), ((0, 0), (0, Dp - D)))

    grid = (Bp // TB,)

    flops = 2 * B * (Cin * D + D * D)
    bytes_accessed = (
        (xb.size + w1b.size + w2b.size) * 2          # bf16 inputs
        + (b1p.size + b2p.size) * 4                  # f32 biases
        + Bp * Dp * jnp.dtype(out_dtype).itemsize    # output
    )

    out = pl.pallas_call(
        _timestep_embedding_kernel,
        out_shape=jax.ShapeDtypeStruct((Bp, Dp), out_dtype),
        grid=grid,
        in_specs=[
            pl.BlockSpec((TB, Cp), lambda i: (i, 0)),   # x: tiled over batch, pipelined
            pl.BlockSpec((Cp, Dp), lambda i: (0, 0)),   # w1: VMEM-resident across grid
            pl.BlockSpec((1, Dp), lambda i: (0, 0)),    # b1: resident
            pl.BlockSpec((Dp, Dp), lambda i: (0, 0)),   # w2: resident
            pl.BlockSpec((1, Dp), lambda i: (0, 0)),    # b2: resident
        ],
        out_specs=pl.BlockSpec((TB, Dp), lambda i: (i, 0)),
        compiler_params=pltpu.CompilerParams(
            dimension_semantics=("parallel",),          # megacore split on v7x
        ),
        cost_estimate=pl.CostEstimate(
            flops=flops,
            transcendentals=B * D,                      # sigmoid in SiLU
            bytes_accessed=bytes_accessed,
        ),
    )(xb, w1b, b1p, w2b, b2p)

    return out[:B, :D]


def _reference_f32(x, w1, b1, w2, b2):
    h = x @ w1 + b1
    h = h * jax.nn.sigmoid(h)
    return h @ w2 + b2


def _reference_bf16(x, w1, b1, w2, b2):
    # Emulates the kernel's bf16-operand / f32-accumulate path.
    f32 = jnp.float32
    xb = x.astype(jnp.bfloat16).astype(f32)
    w1b = w1.astype(jnp.bfloat16).astype(f32)
    w2b = w2.astype(jnp.bfloat16).astype(f32)
    h = xb @ w1b + b1.astype(f32)
    h = h * jax.nn.sigmoid(h)
    hb = h.astype(jnp.bfloat16).astype(f32)
    return hb @ w2b + b2.astype(f32)


if __name__ == "__main__":
    # Small shapes consistent with TimestepEmbedding.forward:
    # sample: (batch, in_channels) -> (batch, time_embed_dim)
    batch = 8
    in_channels = 32
    time_embed_dim = 128

    key = jax.random.PRNGKey(0)
    kx, kw1, kb1, kw2, kb2 = jax.random.split(key, 5)

    x = jax.random.normal(kx, (batch, in_channels), dtype=jnp.float32)
    # torch Linear weight is (out, in); we store the transpose (in, out).
    w1 = jax.random.normal(kw1, (in_channels, time_embed_dim),
                           dtype=jnp.float32) * (1.0 / in_channels ** 0.5)
    b1 = jax.random.normal(kb1, (1, time_embed_dim), dtype=jnp.float32) * 0.01
    w2 = jax.random.normal(kw2, (time_embed_dim, time_embed_dim),
                           dtype=jnp.float32) * (1.0 / time_embed_dim ** 0.5)
    b2 = jax.random.normal(kb2, (1, time_embed_dim), dtype=jnp.float32) * 0.01

    out = timestep_embedding(x, w1, b1, w2, b2)
    out = jax.block_until_ready(out)
    assert out.shape == (batch, time_embed_dim)

    # Tight check vs. a reference that emulates the bf16/f32 mixed precision.
    ref_bf16 = _reference_bf16(x, w1, b1, w2, b2)
    assert jnp.allclose(out, ref_bf16, atol=2e-3, rtol=2e-3), \
        "mismatch vs bf16-emulated reference"

    # Loose sanity check vs. the pure fp32 PyTorch-equivalent forward.
    ref_f32 = _reference_f32(x, w1, b1, w2, b2)
    assert jnp.allclose(out, ref_f32, atol=5e-2, rtol=5e-2), \
        "mismatch vs fp32 reference"

    print("KERNEL_OK")
</pallas_src>

<mosaic_0001>
module attributes {stable_mosaic.version = 11 : i64} {
  func.func @_timestep_embedding_kernel(%arg0: i32, %arg1: memref<16x128xbf16, #tpu.memory_space<vmem>>, %arg2: memref<128x128xbf16, #tpu.memory_space<vmem>>, %arg3: memref<1x128xf32, #tpu.memory_space<vmem>>, %arg4: memref<128x128xbf16, #tpu.memory_space<vmem>>, %arg5: memref<1x128xf32, #tpu.memory_space<vmem>>, %arg6: memref<16x128xf32, #tpu.memory_space<vmem>>) attributes {dimension_semantics = [#tpu.dimension_semantics<parallel>], iteration_bounds = array<i64: 1>, scalar_prefetch = 0 : i64, scratch_operands = 0 : i64, tpu.core_type = #tpu.core_type<tc>, window_params = [{transform_indices = @transform_0, window_bounds = array<i64: 16, 128>}, {pipeline_mode = #tpu.pipeline_mode<synchronous>, transform_indices = @transform_1, window_bounds = array<i64: 128, 128>}, {pipeline_mode = #tpu.pipeline_mode<synchronous>, transform_indices = @transform_2, window_bounds = array<i64: 1, 128>}, {pipeline_mode = #tpu.pipeline_mode<synchronous>, transform_indices = @transform_3, window_bounds = array<i64: 128, 128>}, {pipeline_mode = #tpu.pipeline_mode<synchronous>, transform_indices = @transform_4, window_bounds = array<i64: 1, 128>}, {transform_indices = @transform_5, window_bounds = array<i64: 16, 128>}]} {
    %c0 = arith.constant 0 : index
    %c0_0 = arith.constant 0 : index
    %0 = vector.load %arg1[%c0, %c0_0] : memref<16x128xbf16, #tpu.memory_space<vmem>>, vector<16x128xbf16>
    %c0_1 = arith.constant 0 : index
    %c0_2 = arith.constant 0 : index
    %1 = vector.load %arg2[%c0_1, %c0_2] : memref<128x128xbf16, #tpu.memory_space<vmem>>, vector<128x128xbf16>
    %cst = arith.constant dense<0.000000e+00> : vector<16x128xf32>
    %2 = tpu.matmul %0, %1, %cst {dimension_numbers = #tpu.dot_dimension_numbers<[1], [0], [0], [1], [0, 0, 1, 1], [], []>} : vector<16x128xbf16>, vector<128x128xbf16>, vector<16x128xf32> -> vector<16x128xf32>
    %c0_3 = arith.constant 0 : index
    %c0_4 = arith.constant 0 : index
    %3 = vector.load %arg3[%c0_3, %c0_4] : memref<1x128xf32, #tpu.memory_space<vmem>>, vector<1x128xf32>
    %4 = vector.broadcast %3 : vector<1x128xf32> to vector<16x128xf32>
    %5 = arith.addf %2, %4 : vector<16x128xf32>
    %6 = arith.negf %5 : vector<16x128xf32>
    %7 = math.exp %6 : vector<16x128xf32>
    %cst_5 = arith.constant 1.000000e+00 : f32
    %8 = vector.broadcast %cst_5 : f32 to vector<16x128xf32>
    %9 = arith.addf %8, %7 : vector<16x128xf32>
    %10 = arith.divf %8, %9 : vector<16x128xf32>
    %11 = arith.mulf %5, %10 : vector<16x128xf32>
    %12 = arith.truncf %11 : vector<16x128xf32> to vector<16x128xbf16>
    %c0_6 = arith.constant 0 : index
    %c0_7 = arith.constant 0 : index
    %13 = vector.load %arg4[%c0_6, %c0_7] : memref<128x128xbf16, #tpu.memory_space<vmem>>, vector<128x128xbf16>
    %cst_8 = arith.constant dense<0.000000e+00> : vector<16x128xf32>
    %14 = tpu.matmul %12, %13, %cst_8 {dimension_numbers = #tpu.dot_dimension_numbers<[1], [0], [0], [1], [0, 0, 1, 1], [], []>} : vector<16x128xbf16>, vector<128x128xbf16>, vector<16x128xf32> -> vector<16x128xf32>
    %c0_9 = arith.constant 0 : index
    %c0_10 = arith.constant 0 : index
    %15 = vector.load %arg5[%c0_9, %c0_10] : memref<1x128xf32, #tpu.memory_space<vmem>>, vector<1x128xf32>
    %16 = vector.broadcast %15 : vector<1x128xf32> to vector<16x128xf32>
    %17 = arith.addf %14, %16 : vector<16x128xf32>
    %c0_11 = arith.constant 0 : index
    %c0_12 = arith.constant 0 : index
    %18 = vector.load %arg6[%c0_11, %c0_12] : memref<16x128xf32, #tpu.memory_space<vmem>>, vector<16x128xf32>
    tpu.vector_store %arg6[%c0_11, %c0_12], %17 {strides = array<i32>} : memref<16x128xf32, #tpu.memory_space<vmem>>, vector<16x128xf32>,
    return
  }
  func.func @transform_0(%arg0: i32) -> (i32, i32) {
    %c0_i32 = arith.constant 0 : i32
    %c0_i32_0 = arith.constant 0 : i32
    return %arg0, %c0_i32 : i32, i32
  }
  func.func @transform_1(%arg0: i32) -> (i32, i32) {
    %c0_i32 = arith.constant 0 : i32
    %c0_i32_0 = arith.constant 0 : i32
    %c0_i32_1 = arith.constant 0 : i32
    return %c0_i32, %c0_i32_0 : i32, i32
  }
  func.func @transform_2(%arg0: i32) -> (i32, i32) {
    %c0_i32 = arith.constant 0 : i32
    %c0_i32_0 = arith.constant 0 : i32
    %c0_i32_1 = arith.constant 0 : i32
    return %c0_i32, %c0_i32_0 : i32, i32
  }
  func.func @transform_3(%arg0: i32) -> (i32, i32) {
    %c0_i32 = arith.constant 0 : i32
    %c0_i32_0 = arith.constant 0 : i32
    %c0_i32_1 = arith.constant 0 : i32
    return %c0_i32, %c0_i32_0 : i32, i32
  }
  func.func @transform_4(%arg0: i32) -> (i32, i32) {
    %c0_i32 = arith.constant 0 : i32
    %c0_i32_0 = arith.constant 0 : i32
    %c0_i32_1 = arith.constant 0 : i32
    return %c0_i32, %c0_i32_0 : i32, i32
  }
  func.func @transform_5(%arg0: i32) -> (i32, i32) {
    %c0_i32 = arith.constant 0 : i32
    %c0_i32_0 = arith.constant 0 : i32
    return %arg0, %c0_i32 : i32, i32
  }
}

</mosaic_0001>

<bundles_post_ra>
// kernel: timestep_embedding.1
= control target key start
LH: loop header
LB: loop body
LE: loop exit
PB: predicated region body
PF: predicated region fallthrough
CT: control target
= control target key end

     0   :  { %v380_v0 = vmov 0.0   ;;  %vm381_vm0 = vmmov 0   ;;  %s475_s1 = inlined_call_operand.vmem [shape: bf16[128,128], index: 1, kind: input, shape index: {}]   ;;  %s476_s0 = inlined_call_operand.vmem [shape: bf16[16,128], index: 0, kind: input, shape index: {}]   ;;  %s477_s3 = inlined_call_operand.vmem [shape: bf16[128,128], index: 3, kind: input, shape index: {}]   ;;  %s478_s2 = inlined_call_operand.vmem [shape: f32[1,128], index: 2, kind: input, shape index: {}]   ;;  %s479_s4 = inlined_call_operand.vmem [shape: f32[1,128], index: 4, kind: input, shape index: {}]   ;;  %s480_s5 = inlined_call_operand.vmem [shape: f32[16,128], index: 5, kind: output, shape index: {}]  }
   0x1   :  { %313 = vmatprep.subr.bf16.mxu0 %v380_v0  ;;  %v355_v1 = vld [vmem:[%s475_s1 + $0x38] sm:$0xff]   ;;  %329 = vmatprep.mubr.msk.bf16.mxu0 %vm381_vm0, %v380_v0  ;;  %v356_v2 = vld [vmem:[%s475_s1 + $0x30] sm:$0xff]   ;;  %v357_v3 = vld [vmem:[%s475_s1 + $0x28] sm:$0xff]  }
   0x2   :  { %333 = vmatprep.subr.bf16.mxu1 %v380_v0  ;;  %349 = vmatprep.mubr.msk.bf16.mxu1 %vm381_vm0, %v380_v0  ;;  %v358_v4 = vld [vmem:[%s475_s1 + $0x20] sm:$0xff]   ;;  %v359_v5 = vld [vmem:[%s475_s1 + $0x18] sm:$0xff]   ;;  %v360_v6 = vld [vmem:[%s475_s1 + $0x10] sm:$0xff]  }
   0x3   :  { %314 = vmatpush3.bf16.msra.mxu0 %v355_v1  ;;  %v361_v7 = vld [vmem:[%s475_s1 + $0x8] sm:$0xff]   ;;  %v362_v8 = vld [vmem:[%s475_s1] sm:$0xff]   ;;  %v364_v10 = vld [vmem:[%s477_s3 + $0x38] sm:$0xff]  }
   0x4   :  { %315 = vmatprep.subr.bf16.mxu0 %v380_v0  ;;  %v363_v9 = vld [vmem:[%s476_s0] sm:$0xff]   ;;  %334 = vmatpush3.bf16.msra.mxu1 %v364_v10  ;;  %v365_v11 = vld [vmem:[%s477_s3 + $0x30] sm:$0xff]   ;;  %v366_v12 = vld [vmem:[%s477_s3 + $0x28] sm:$0xff]  }
   0x5   :  { %335 = vmatprep.subr.bf16.mxu1 %v380_v0  ;;  %v367_v13 = vld [vmem:[%s477_s3 + $0x20] sm:$0xff]   ;;  %v368_v14 = vld [vmem:[%s477_s3 + $0x18] sm:$0xff]   ;;  %v369_v15 = vld [vmem:[%s477_s3 + $0x10] sm:$0xff]  }
   0x6   :  { %v370_v16 = vld [vmem:[%s477_s3 + $0x8] sm:$0xff]   ;;  %v371_v17 = vld [vmem:[%s477_s3] sm:$0xff]  }
   0x7   :  { %316 = vmatpush3.bf16.msra.mxu0 %v356_v2  ;;  %v274_v18 = vld [vmem:[%s478_s2] ss:$0 sm:$0xff] }
   0x8   :  { %317 = vmatprep.subr.bf16.mxu0 %v380_v0  ;;  %336 = vmatpush3.bf16.msra.mxu1 %v365_v11  ;;  %v286_v36 = vld [vmem:[%s479_s4] ss:$0 sm:$0xff] }
   0x9   :  { %337 = vmatprep.subr.bf16.mxu1 %v380_v0 }
   0xb   :  { %318 = vmatpush3.bf16.msra.mxu0 %v357_v3 }
   0xc   :  { %319 = vmatprep.subr.bf16.mxu0 %v380_v0  ;;  %338 = vmatpush3.bf16.msra.mxu1 %v366_v12 }
   0xd   :  { %339 = vmatprep.subr.bf16.mxu1 %v380_v0 }
   0xf   :  { %320 = vmatpush3.bf16.msra.mxu0 %v358_v4 }
  0x10   :  { %321 = vmatprep.subr.bf16.mxu0 %v380_v0  ;;  %340 = vmatpush3.bf16.msra.mxu1 %v367_v13 }
  0x11   :  { %341 = vmatprep.subr.bf16.mxu1 %v380_v0 }
  0x13   :  { %322 = vmatpush3.bf16.msra.mxu0 %v359_v5 }
  0x14   :  { %323 = vmatprep.subr.bf16.mxu0 %v380_v0  ;;  %342 = vmatpush3.bf16.msra.mxu1 %v368_v14 }
  0x15   :  { %343 = vmatprep.subr.bf16.mxu1 %v380_v0 }
  0x17   :  { %324 = vmatpush3.bf16.msra.mxu0 %v360_v6 }
  0x18   :  { %325 = vmatprep.subr.bf16.mxu0 %v380_v0  ;;  %344 = vmatpush3.bf16.msra.mxu1 %v369_v15 }
  0x19   :  { %345 = vmatprep.subr.bf16.mxu1 %v380_v0 }
  0x1b   :  { %326 = vmatpush3.bf16.msra.mxu0 %v361_v7 }
  0x1c   :  { %327 = vmatprep.subr.bf16.mxu0 %v380_v0  ;;  %346 = vmatpush3.bf16.msra.mxu1 %v370_v16 }
  0x1d   :  { %347 = vmatprep.subr.bf16.mxu1 %v380_v0 }
  0x1f   :  { %328 = vmatpush3.bf16.msra.mxu0 %v362_v8 }
  0x20   :  { %348 = vmatpush3.bf16.msra.mxu1 %v371_v17 }
  0x22   :  { %330 = vmatmul.mubr.bf16.vlgmr.msra.gmra.mxu0 %v363_v9 }
  0xe2   :  { %v134_v19 = vpop.f32.mrf.mxu0 }
  0xe3   :  { %v135_v20 = vadd.f32 %v274_v18, %v134_v19 }
  0xe4   :  { %v331_v21 = vpop.f32.mrf.mxu0 }
  0xe5   :  { %v284_v22 = vmul.f32 -1.442695, %v135_v20 }
  0xe6   :  { %v137_v23 = vpop.f32.mrf.mxu0 }
  0xe7   :  { %372 = vpow2.f32 %v284_v22  ;;  %v138_v24 = vadd.f32 %v274_v18, %v137_v23 }
  0xe8   :  { %v332_v25 = vpop.f32.mrf.mxu0 }
  0xe9   :  { %v285_v26 = vmul.f32 -1.442695, %v138_v24 }
  0xeb   :  { %374 = vpow2.f32 %v285_v26 }
  0xf4   :  { %v373_v27 = vpop.eup %372 }
  0xf5   :  { %v147_v28 = vadd.f32 1.0, %v373_v27 }
  0xf7   :  { %376 = vrcp.f32 %v147_v28 }
  0xf8   :  { %v375_v29 = vpop.eup %374 }
  0xf9   :  { %v148_v30 = vadd.f32 1.0, %v375_v29 }
  0xfb   :  { %378 = vrcp.f32 %v148_v30 }
 0x104   :  { %v377_v31 = vpop.eup %376 }
 0x105   :  { %v153_v33 = vmul.f32 %v377_v31, %v135_v20 }
 0x108   :  { %v379_v32 = vpop.eup %378 }
 0x109   :  { %v154_v34 = vmul.f32 %v379_v32, %v138_v24 }
 0x10b   :  { %v155_v35 = vpack.c.bf16 %v154_v34, %v153_v33 }
 0x10d   :  { %350 = vmatmul.mubr.bf16.vlgmr.msra.gmra.mxu1 %v155_v35 }
 0x1cd   :  { %v261_v37 = vpop.f32.mrf.mxu1 }
 0x1ce   :  { %v262_v38 = vadd.f32 %v286_v36, %v261_v37 }
 0x1cf   :  { %v351_v39 = vpop.f32.mrf.mxu1 }
 0x1d0   :  { %268 = vst [vmem:[%s480_s5] sm:$0xff] %v262_v38 }
 0x1d1   :  { %v264_v40 = vpop.f32.mrf.mxu1 }
 0x1d2   :  { %v265_v41 = vadd.f32 %v286_v36, %v264_v40 }
 0x1d3   :  { %v352_v42 = vpop.f32.mrf.mxu1 }
 0x1d4   :  { %269 = vst [vmem:[%s480_s5 + $0x8] sm:$0xff] %v265_v41 }

</bundles_post_ra>
